<compile_context>
chip_gen: v7x
topology: tpu7x:2x2x1
jax: 0.10.0
libtpu: 0.0.40
codegen_flags: <defaults>
</compile_context>

<pallas_src>
import jax
import jax.numpy as jnp
from jax import lax
from jax.experimental import pallas as pl
from jax.experimental.pallas import tpu as pltpu

_LANE = 128      # lane width (last-dim vreg axis)
_SUBLANE = 8     # sublane width (second-to-last vreg axis)
_MAX_TM = 512    # row-tile cap: f32 tiles (512 x 128 out + 512 x u_dim in),
                 # double-buffered, stay far below v7x's 64 MiB VMEM.


def _round_up(a, b):
    return ((a + b - 1) // b) * b


def _input_matrix_kernel(x_ref, w_ref, o_ref):
    # x_ref: (TM, u_dim)   w_ref: (q_pad, u_dim)   o_ref: (TM, q_pad)
    # Contract on the shared u_dim axis (== torch `x @ W.T`) directly on the
    # torch-layout weight; MXU handles this natively, no transpose needed.
    o_ref[...] = lax.dot_general(
        x_ref[...],
        w_ref[...],
        dimension_numbers=(((1,), (1,)), ((), ())),
        preferred_element_type=jnp.float32,
    ).astype(o_ref.dtype)


def input_matrix_layer(x, weight):
    """Apply y = x @ weight.T where weight has shape (q_dim, u_dim).

    x may have arbitrary leading dims (like nn.Linear); the last dim is u_dim.
    """
    q_dim, u_dim = weight.shape
    orig_shape = x.shape
    assert orig_shape[-1] == u_dim

    x2d = x.reshape(-1, u_dim)
    n = x2d.shape[0]

    # Lane-dense output: pad q_dim up to a multiple of 128 by adding zero rows
    # to the weight (done once per call; for a fixed weight this is cheap glue).
    q_pad = _round_up(max(q_dim, _LANE), _LANE)
    w_pad = jnp.zeros((q_pad, u_dim), weight.dtype).at[:q_dim, :].set(weight)

    # Tile the batch axis; weight stays VMEM resident across grid steps.
    tm = min(_MAX_TM, _round_up(n, _SUBLANE))
    n_pad = _round_up(n, tm)
    if n_pad != n:
        x2d = jnp.pad(x2d, ((0, n_pad - n), (0, 0)))

    grid = (n_pad // tm,)

    out = pl.pallas_call(
        _input_matrix_kernel,
        out_shape=jax.ShapeDtypeStruct((n_pad, q_pad), x.dtype),
        grid_spec=pltpu.PrefetchScalarGridSpec(
            num_scalar_prefetch=0,
            grid=grid,
            in_specs=[
                pl.BlockSpec((tm, u_dim), lambda i: (i, 0)),      # x streams (pipelined)
                pl.BlockSpec((q_pad, u_dim), lambda i: (0, 0)),   # weight: VMEM resident
            ],
            out_specs=pl.BlockSpec((tm, q_pad), lambda i: (i, 0)),
        ),
        compiler_params=pltpu.CompilerParams(
            dimension_semantics=("parallel",),   # shardable across v7x's 2 TCs
            vmem_limit_bytes=48 * 1024 * 1024,   # safe ceiling on v5e/v6e/v7x
        ),
    )(x2d, w_pad)

    # Slice off batch padding and the q_dim padding, restore leading dims.
    return out[:n, :q_dim].reshape(*orig_shape[:-1], q_dim)


if __name__ == "__main__":
    key = jax.random.PRNGKey(0)
    k_w, k_x1, k_x2 = jax.random.split(key, 3)

    # Shapes consistent with the module: q_dim=6, u_dim=4
    q_dim, u_dim = 6, 4

    # Deterministic fixed "input_mat" (the weight of shape (q_dim, u_dim))
    input_mat = jax.random.normal(k_w, (q_dim, u_dim), dtype=jnp.float32)

    # Case 1: simple 2-D batch
    x1 = jax.random.normal(k_x1, (8, u_dim), dtype=jnp.float32)
    y1 = input_matrix_layer(x1, input_mat)
    jax.block_until_ready(y1)
    assert y1.shape == (8, q_dim)
    assert jnp.allclose(y1, x1 @ input_mat.T, atol=1e-5, rtol=1e-5)

    # Case 2: arbitrary leading dims (exercises row padding + output slicing)
    x2 = jax.random.normal(k_x2, (3, 5, u_dim), dtype=jnp.float32)
    y2 = input_matrix_layer(x2, input_mat)
    jax.block_until_ready(y2)
    assert y2.shape == (3, 5, q_dim)
    assert jnp.allclose(y2, x2 @ input_mat.T, atol=1e-5, rtol=1e-5)

    print("KERNEL_OK")
</pallas_src>

<mosaic_0001>
module attributes {stable_mosaic.version = 11 : i64} {
  func.func @_input_matrix_kernel(%arg0: i32, %arg1: memref<8x4xf32, #tpu.memory_space<vmem>>, %arg2: memref<128x4xf32, #tpu.memory_space<vmem>>, %arg3: memref<8x128xf32, #tpu.memory_space<vmem>>) attributes {dimension_semantics = [#tpu.dimension_semantics<parallel>], iteration_bounds = array<i64: 1>, scalar_prefetch = 0 : i64, scratch_operands = 0 : i64, tpu.core_type = #tpu.core_type<tc>, window_params = [{transform_indices = @transform_0, window_bounds = array<i64: 8, 4>}, {pipeline_mode = #tpu.pipeline_mode<synchronous>, transform_indices = @transform_1, window_bounds = array<i64: 128, 4>}, {transform_indices = @transform_2, window_bounds = array<i64: 8, 128>}]} {
    %c0 = arith.constant 0 : index
    %c0_0 = arith.constant 0 : index
    %0 = vector.load %arg1[%c0, %c0_0] : memref<8x4xf32, #tpu.memory_space<vmem>>, vector<8x4xf32>
    %c0_1 = arith.constant 0 : index
    %c0_2 = arith.constant 0 : index
    %1 = vector.load %arg2[%c0_1, %c0_2] : memref<128x4xf32, #tpu.memory_space<vmem>>, vector<128x4xf32>
    %cst = arith.constant dense<0.000000e+00> : vector<8x128xf32>
    %2 = tpu.matmul %0, %1, %cst {dimension_numbers = #tpu.dot_dimension_numbers<[1], [1], [0], [0], [0, 0, 1, 0], [], []>} : vector<8x4xf32>, vector<128x4xf32>, vector<8x128xf32> -> vector<8x128xf32>
    %c0_3 = arith.constant 0 : index
    %c0_4 = arith.constant 0 : index
    %3 = vector.load %arg3[%c0_3, %c0_4] : memref<8x128xf32, #tpu.memory_space<vmem>>, vector<8x128xf32>
    tpu.vector_store %arg3[%c0_3, %c0_4], %2 {strides = array<i32>} : memref<8x128xf32, #tpu.memory_space<vmem>>, vector<8x128xf32>,
    return
  }
  func.func @transform_0(%arg0: i32) -> (i32, i32) {
    %c0_i32 = arith.constant 0 : i32
    %c0_i32_0 = arith.constant 0 : i32
    return %arg0, %c0_i32 : i32, i32
  }
  func.func @transform_1(%arg0: i32) -> (i32, i32) {
    %c0_i32 = arith.constant 0 : i32
    %c0_i32_0 = arith.constant 0 : i32
    %c0_i32_1 = arith.constant 0 : i32
    return %c0_i32, %c0_i32_0 : i32, i32
  }
  func.func @transform_2(%arg0: i32) -> (i32, i32) {
    %c0_i32 = arith.constant 0 : i32
    %c0_i32_0 = arith.constant 0 : i32
    return %arg0, %c0_i32 : i32, i32
  }
}

</mosaic_0001>

<bundles_post_ra>
// kernel: tpu_custom_call.1
= control target key start
LH: loop header
LB: loop body
LE: loop exit
PB: predicated region body
PF: predicated region fallthrough
CT: control target
= control target key end

     0   :  { %vm29_vm0 = vcmask 31744   ;;  %v295_v2 = vmov 0.0|0.0   ;;  %vm296_vm2 = vmmov 0   ;;  %v297_v5 = vmov 0.0   ;;  %s400_s0 = inlined_call_operand.vmem [shape: f32[8,4], index: 0, kind: input, shape index: {}]   ;;  %s401_s1 = inlined_call_operand.vmem [shape: f32[128,4], index: 1, kind: input, shape index: {}]   ;;  %s402_s2 = inlined_call_operand.hbm [shape: f32[8,128], index: 2, kind: output, shape index: {}]  }
   0x1   :  { %v13_v0 = vld [vmem:[%s401_s1] sm:$0xff]  ;;  %v14_v1 = vld [vmem:[%s401_s1 + $0x8] sm:$0xff]  ;;  %235 = vmatprep.subr.bf16.mxu0 %v295_v2  ;;  %vm322_vm1 = vmpackc.low %vm29_vm0, %vm29_vm0  ;;  %232 = vmatprep.mubr.msk.f32.mxu0 %vm296_vm2, %v297_v5 }
   0x2   :  { %v236_v3 = vpack.c.bf16 %v14_v1, %v13_v0  ;;  %v15_v6 = vld [vmem:[%s401_s1 + $0x10] sm:$0xff]  ;;  %v16_v7 = vld [vmem:[%s401_s1 + $0x18] sm:$0xff] }
   0x4   :  { %238 = vmatpush3.bf16.xpose.msk.msra.mxu0 %vm322_vm1, %v236_v3 }
   0x5   :  { %239 = vmatprep.subr.bf16.mxu0 %v295_v2 }
   0x6   :  { %7 = vsyncpa [#allocation3], 0  ;;  %v240_v8 = vpack.c.bf16 %v16_v7, %v15_v6  ;;  %v17_v9 = vld [vmem:[%s401_s1 + $0x20] sm:$0xff]  ;;  %v18_v10 = vld [vmem:[%s401_s1 + $0x28] sm:$0xff]  ;;  %s298_s15 = smov [#allocation2]  }
   0x7   :  { %v244_v11 = vpack.c.bf16 %v18_v10, %v17_v9  ;;  %v19_v12 = vld [vmem:[%s401_s1 + $0x30] sm:$0xff]  ;;  %v20_v13 = vld [vmem:[%s401_s1 + $0x38] sm:$0xff]  ;;  %v21_v15 = vld [vmem:[%s401_s1 + $0x40] sm:$0xff]  ;;  %s158_s16 = sshll.u32 %s298_s15, 4  ;;  %s159_s16 = int_to_ptr.vmem [resolvable:$true] %s158_s16 }
   0x8   :  { %v248_v14 = vpack.c.bf16 %v20_v13, %v19_v12  ;;  %v22_v16 = vld [vmem:[%s401_s1 + $0x48] sm:$0xff]  ;;  %v23_v18 = vld [vmem:[%s401_s1 + $0x50] sm:$0xff]  ;;  %v24_v19 = vld [vmem:[%s401_s1 + $0x58] sm:$0xff]  ;;  %s271_s17 = scalar_lea.vmem %s159_s16, 128  ;;  %p276_p1 = scmp.lt.s32.totalorder %s159_s16, %s159_s16 }
   0x9   :  { %v252_v17 = vpack.c.bf16 %v22_v16, %v21_v15  ;;  %v256_v20 = vpack.c.bf16 %v24_v19, %v23_v18  ;;  %v25_v21 = vld [vmem:[%s401_s1 + $0x60] sm:$0xff]  ;;  %v26_v22 = vld [vmem:[%s401_s1 + $0x68] sm:$0xff]  ;;  %v27_v24 = vld [vmem:[%s401_s1 + $0x70] sm:$0xff]  ;;  %p272_p0 = scmp.ne.s32.totalorder %s159_s16, %s271_s17  ;;  %p277_p2 = scmp.lt.s32.totalorder %s271_s17, %s271_s17 }
   0xa   :  { %v260_v23 = vpack.c.bf16 %v26_v22, %v25_v21  ;;  %v28_v25 = vld [vmem:[%s401_s1 + $0x78] sm:$0xff]  ;;  %v12_v27 = vld [vmem:[%s400_s0] sm:$0xff] }
   0xb   :  { %v264_v26 = vpack.c.bf16 %v28_v25, %v27_v24  ;;  %p278_p3 = por %p277_p2, %p276_p1 }
   0xc   :  { %242 = vmatpush3.bf16.xpose.msk.msra.mxu0 %vm322_vm1, %v240_v8 }
   0xd   :  { %243 = vmatprep.subr.bf16.mxu0 %v295_v2  ;;  %p279_p4 = pnand %p278_p3, %p272_p0 }
  0x14   :  { %246 = vmatpush3.bf16.xpose.msk.msra.mxu0 %vm322_vm1, %v244_v11 }
  0x15   :  { %247 = vmatprep.subr.bf16.mxu0 %v295_v2 }
  0x1c   :  { %250 = vmatpush3.bf16.xpose.msk.msra.mxu0 %vm322_vm1, %v248_v14 }
  0x1d   :  { %251 = vmatprep.subr.bf16.mxu0 %v295_v2 }
  0x24   :  { %254 = vmatpush3.bf16.xpose.msk.msra.mxu0 %vm322_vm1, %v252_v17 }
  0x25   :  { %255 = vmatprep.subr.bf16.mxu0 %v295_v2 }
  0x2c   :  { %258 = vmatpush3.bf16.xpose.msk.msra.mxu0 %vm322_vm1, %v256_v20 }
  0x2d   :  { %259 = vmatprep.subr.bf16.mxu0 %v295_v2 }
  0x34   :  { %262 = vmatpush3.bf16.xpose.msk.msra.mxu0 %vm322_vm1, %v260_v23 }
  0x35   :  { %263 = vmatprep.subr.bf16.mxu0 %v295_v2 }
  0x3c   :  { %266 = vmatpush3.bf16.xpose.msk.msra.mxu0 %vm322_vm1, %v264_v26 }
  0x43   :  { %233 = vmatmul.mubr.msk.f32.vlgmr.msra.gmra.mrb[0].mxu0 %vm29_vm0, %v12_v27 }
 0x116   :  { %v147_v28 = vpop.f32.mrb[0].mxu0 }
 0x117   :  { %151 = vst [vmem:[#allocation2] sm:$0xff] %v147_v28  ;;  %v234_v29 = vpop.f32.mrb[1].mxu0 }
 0x118   :  { %282 = shalt.err (!%p279_p4)
}
 0x119   :  { %s283_s19 = scalar_lea.hbm %s402_s2, 128 }
 0x11a   :  { %p284_p5 = scmp.ne.s32.totalorder %s402_s2, %s283_s19  ;;  %p287_p6 = scmp.lt.u32.totalorder %s283_s19, %s402_s2 }
 0x11c   :  { %p289_p7 = pnand %p287_p6, %p284_p5 }
 0x11e   :  { %292 = shalt.err (!%p289_p7)
}
 0x11f   :  { %161 = dma.vmem_to_hbm [thread:$0]  %s159_s16, 128, %s402_s2, [#allocation3]  }
 0x120   :  { %293 = dma.done.wait [#allocation3], 128  }
 0x121   :  { %294 = vsyncadd [#allocation3], 4294967168 }
 0x122   :  { %165 = vsyncpa [#allocation3], 1 }

</bundles_post_ra>
